<compile_context>
chip_gen: v7x
topology: tpu7x:2x2x1
jax: 0.10.0
libtpu: 0.0.40
codegen_flags: <defaults>
</compile_context>

<pallas_src>
import jax
import jax.numpy as jnp
from jax import lax
from jax.experimental import pallas as pl
from jax.experimental.pallas import tpu as pltpu


def _round_up(v, m):
    return ((v + m - 1) // m) * m


def tanh_drift_kernel(x_ref, w1b_ref, whb_ref, w5b_ref, bhb_ref, b5_ref, o_ref):
    # x_ref   : (ncb, d, cb)    ncb chunks of the batch block; batch on lanes
    # w1b_ref : (d, n, cb)      fc1 weight columns, pre-broadcast to lane width
    # whb_ref : (3*n, n, cb)    fc2..fc4 columns, stacked:  whb[l*n+k, o, :] = W_{l+2}[o, k]
    # w5b_ref : (n, cb)         fc5 weight column, pre-broadcast
    # bhb_ref : (4, n, cb)      biases of fc1..fc4, pre-broadcast
    # b5_ref  : (1, 1)          fc5 bias
    # o_ref   : (ncb, 1, cb)    lane-dense output chunks
    num_chunks, d, _ = x_ref.shape
    n = bhb_ref.shape[1]
    n_hidden = whb_ref.shape[0] // n

    w5b = w5b_ref[...]          # (n, cb)  — small, hoisted out of the chunk loop
    b5 = b5_ref[...]            # (1, 1)

    def compute_chunk(xs):
        # xs: (d, cb) — features on sublanes, batch on lanes.
        # fc1: unrolled VPU MACs; weight slabs are already lane-replicated, so each
        # term is a plain vld + mul + add (no lane splats on the VALU slot).
        acc = bhb_ref[0]                                    # (n, cb)
        for k in range(d):
            acc = acc + w1b_ref[k] * xs[k:k + 1, :]
        h = jnp.tanh(acc)                                   # EUP
        # fc2..fc4
        for l in range(n_hidden):
            acc = bhb_ref[l + 1]
            for k in range(n):
                acc = acc + whb_ref[l * n + k] * h[k:k + 1, :]
            h = jnp.tanh(acc)
        # fc5: multiply + sublane (XLU) reduction -> lane-dense (1, cb) row.
        return jnp.sum(w5b * h, axis=0, keepdims=True) + b5

    if num_chunks == 1:
        o_ref[0] = compute_chunk(x_ref[0]).astype(o_ref.dtype)
    else:
        def body(c, carry):
            o_ref[c] = compute_chunk(x_ref[c]).astype(o_ref.dtype)
            return carry
        lax.fori_loop(0, num_chunks, body, 0)


def pack_params(params, cb):
    """Pack PyTorch-layout params (wX: (out,in), bX: (out,)) into lane-pre-broadcast
    kernel operands of chunk width cb."""
    w1, w2, w3, w4, w5 = (params[f"w{i}"] for i in range(1, 6))
    b1, b2, b3, b4, b5 = (params[f"b{i}"] for i in range(1, 6))
    n, d = w1.shape
    # fc1 columns: w1b[k, o, :] = W1[o, k]
    w1b = jnp.broadcast_to(jnp.transpose(w1)[:, :, None], (d, n, cb))
    # fc2..fc4 columns stacked on one leading axis: whb[l*n + k, o, :] = W_{l+2}[o, k]
    wh = jnp.stack([w2, w3, w4])                                    # (3, n, n) = [l, o, k]
    whb = jnp.broadcast_to(
        jnp.transpose(wh, (0, 2, 1)).reshape(3 * n, n)[:, :, None], (3 * n, n, cb))
    # biases of fc1..fc4: bhb[i, o, :] = b_{i+1}[o]
    bhb = jnp.broadcast_to(jnp.stack([b1, b2, b3, b4])[:, :, None], (4, n, cb))
    # fc5 column: w5b[k, :] = W5[0, k]
    w5b = jnp.broadcast_to(jnp.reshape(w5, (n, 1)), (n, cb))
    b5c = jnp.reshape(b5, (1, 1))
    return w1b, whb, w5b, bhb, b5c


def tanh_drift(x, params, *, block_b=65536, chunk=2048):
    """x: (B, d) float32.  params: PyTorch-layout dict w1..w5 (out,in), b1..b5 (out,).
    Returns (B, 1) float32, matching TanhDrift.forward."""
    B, d = x.shape
    n = params["w1"].shape[0]

    # ---- tile-size selection -------------------------------------------------
    if B <= chunk:
        cb = int(B)                 # tiny problem: full batch as a single chunk
        nct = 1                     # total chunks
        ncb = 1                     # chunks per grid block
    else:
        cb = _round_up(int(chunk), 128)          # chunk = lane tile, multiple of 128
        nct = pl.cdiv(B, cb)                     # total number of lane chunks
        ncb_max = max(1, int(block_b) // cb)     # chunks per grid block (upper bound)
        # keep >= 2 grid steps when the batch allows it (v7x: 2 TensorCores)
        n_blocks = max(2, pl.cdiv(nct, ncb_max))
        ncb = max(1, min(ncb_max, pl.cdiv(nct, n_blocks)))

    Bp = nct * cb

    # ---- input layout: (B, d) -> chunk-blocked, batch-on-lanes (nct, d, cb) ---
    # Pad by at most one chunk; pad + transpose + reshape fuse into one XLA pass
    # (the (B,d)->(d,B) transpose was needed anyway for the batch-on-lanes layout).
    xp = x if Bp == B else jnp.pad(x, ((0, Bp - B), (0, 0)))
    xb = jnp.transpose(xp.reshape(nct, cb, d), (0, 2, 1))           # (nct, d, cb)

    w1b, whb, w5b, bhb, b5c = pack_params(params, cb)

    grid = (pl.cdiv(nct, ncb),)     # ragged last block is fine: OOB writes dropped
    out = pl.pallas_call(
        tanh_drift_kernel,
        out_shape=jax.ShapeDtypeStruct((nct, 1, cb), jnp.float32),
        grid=grid,
        in_specs=[
            pl.BlockSpec((ncb, d, cb), lambda i: (i, 0, 0)),   # x block (re-DMA'd per step)
            pl.BlockSpec(w1b.shape, lambda i: (0, 0, 0)),      # weights: constant index_maps
            pl.BlockSpec(whb.shape, lambda i: (0, 0, 0)),      #   -> stay VMEM-resident
            pl.BlockSpec(w5b.shape, lambda i: (0, 0)),
            pl.BlockSpec(bhb.shape, lambda i: (0, 0, 0)),
            pl.BlockSpec(b5c.shape, lambda i: (0, 0)),
        ],
        out_specs=pl.BlockSpec((ncb, 1, cb), lambda i: (i, 0, 0)),  # lane-dense output
        compiler_params=pltpu.CompilerParams(
            dimension_semantics=("parallel",),        # shard batch across TCs (v7x)
            vmem_limit_bytes=32 * 1024 * 1024,        # ~12 MiB worst-case usage, see header
        ),
    )(xb, w1b, whb, w5b, bhb, b5c)

    out = out.reshape(Bp, 1)        # pure reshape (same element order), no data movement
    return out if Bp == B else out[:B]


def init_params(key, d=3, n=8):
    """Deterministic init mirroring nn.Linear: U(-1/sqrt(fan_in), 1/sqrt(fan_in)),
    weights stored in PyTorch layout (out_features, in_features)."""
    sizes = [(n, d), (n, n), (n, n), (n, n), (1, n)]
    params = {}
    keys = jax.random.split(key, 2 * len(sizes))
    for i, (out_f, in_f) in enumerate(sizes):
        bound = 1.0 / jnp.sqrt(jnp.float32(in_f))
        params[f"w{i + 1}"] = jax.random.uniform(
            keys[2 * i], (out_f, in_f), jnp.float32, -bound, bound)
        params[f"b{i + 1}"] = jax.random.uniform(
            keys[2 * i + 1], (out_f,), jnp.float32, -bound, bound)
    return params


def tanh_drift_ref(x, params):
    h = x
    for i in range(1, 5):
        h = jnp.tanh(h @ params[f"w{i}"].T + params[f"b{i}"])
    return h @ params["w5"].T + params["b5"]


if __name__ == "__main__":
    d, n = 3, 8
    key = jax.random.PRNGKey(0)
    kp, k1, k2, k3 = jax.random.split(key, 4)
    params = init_params(kp, d=d, n=n)

    # Case 1: multi grid-step + in-kernel chunk loop + ragged last grid block.
    B1 = 384
    x1 = jax.random.normal(k1, (B1, d), dtype=jnp.float32)
    out1 = jax.block_until_ready(tanh_drift(x1, params, block_b=256, chunk=128))
    ref1 = tanh_drift_ref(x1, params)
    assert out1.shape == (B1, 1)
    assert jnp.allclose(out1, ref1, atol=2e-5, rtol=1e-4), "mismatch vs reference (tiled)"

    # Case 2: tiny batch, single full-array block (module's native problem size).
    B2 = 16
    x2 = jax.random.normal(k2, (B2, d), dtype=jnp.float32)
    out2 = jax.block_until_ready(tanh_drift(x2, params))
    ref2 = tanh_drift_ref(x2, params)
    assert out2.shape == (B2, 1)
    assert jnp.allclose(out2, ref2, atol=2e-5, rtol=1e-4), "mismatch vs reference (small)"

    # Case 3: default tile parameters, batch padded up to one chunk, 2 grid steps.
    B3 = 3000
    x3 = jax.random.normal(k3, (B3, d), dtype=jnp.float32)
    out3 = jax.block_until_ready(tanh_drift(x3, params))
    ref3 = tanh_drift_ref(x3, params)
    assert out3.shape == (B3, 1)
    assert jnp.allclose(out3, ref3, atol=2e-5, rtol=1e-4), "mismatch vs reference (default)"

    print("KERNEL_OK")
</pallas_src>

<mosaic_0001>
module attributes {stable_mosaic.version = 11 : i64} {
  func.func @tanh_drift_kernel(%arg0: i32, %arg1: memref<2x3x128xf32, #tpu.memory_space<vmem>>, %arg2: memref<3x8x128xf32, #tpu.memory_space<vmem>>, %arg3: memref<24x8x128xf32, #tpu.memory_space<vmem>>, %arg4: memref<8x128xf32, #tpu.memory_space<vmem>>, %arg5: memref<4x8x128xf32, #tpu.memory_space<vmem>>, %arg6: memref<1x1xf32, #tpu.memory_space<vmem>>, %arg7: memref<2x1x128xf32, #tpu.memory_space<vmem>>) attributes {dimension_semantics = [#tpu.dimension_semantics<parallel>], iteration_bounds = array<i64: 2>, scalar_prefetch = 0 : i64, scratch_operands = 0 : i64, tpu.core_type = #tpu.core_type<tc>, window_params = [{transform_indices = @transform_0, window_bounds = array<i64: 2, 3, 128>}, {pipeline_mode = #tpu.pipeline_mode<synchronous>, transform_indices = @transform_1, window_bounds = array<i64: 3, 8, 128>}, {pipeline_mode = #tpu.pipeline_mode<synchronous>, transform_indices = @transform_2, window_bounds = array<i64: 24, 8, 128>}, {pipeline_mode = #tpu.pipeline_mode<synchronous>, transform_indices = @transform_3, window_bounds = array<i64: 8, 128>}, {pipeline_mode = #tpu.pipeline_mode<synchronous>, transform_indices = @transform_4, window_bounds = array<i64: 4, 8, 128>}, {pipeline_mode = #tpu.pipeline_mode<synchronous>, transform_indices = @transform_5, window_bounds = array<i64: 1, 1>}, {transform_indices = @transform_6, window_bounds = array<i64: 2, 1, 128>}]} {
    %c0 = arith.constant 0 : index
    %c0_0 = arith.constant 0 : index
    %0 = vector.load %arg4[%c0, %c0_0] : memref<8x128xf32, #tpu.memory_space<vmem>>, vector<8x128xf32>
    %c0_1 = arith.constant 0 : index
    %c0_2 = arith.constant 0 : index
    %1 = vector.load %arg6[%c0_1, %c0_2] : memref<1x1xf32, #tpu.memory_space<vmem>>, vector<1x1xf32>
    %c0_i32 = arith.constant 0 : i32
    %c2_i32 = arith.constant 2 : i32
    %2 = arith.addi %c0_i32, %c2_i32 : i32
    %c1_i32 = arith.constant 1 : i32
    scf.for %arg8 = %c0_i32 to %2 step %c1_i32  : i32 {
      %3 = arith.index_cast %arg8 : i32 to index
      %c0_4 = arith.constant 0 : index
      %c0_5 = arith.constant 0 : index
      %4 = vector.load %arg1[%3, %c0_4, %c0_5] : memref<2x3x128xf32, #tpu.memory_space<vmem>>, vector<1x3x128xf32>
      %5 = vector.shape_cast %4 : vector<1x3x128xf32> to vector<3x128xf32>
      %c0_6 = arith.constant 0 : index
      %c0_7 = arith.constant 0 : index
      %c0_8 = arith.constant 0 : index
      %6 = vector.load %arg5[%c0_6, %c0_7, %c0_8] : memref<4x8x128xf32, #tpu.memory_space<vmem>>, vector<1x8x128xf32>
      %7 = vector.shape_cast %6 : vector<1x8x128xf32> to vector<8x128xf32>
      %c0_9 = arith.constant 0 : index
      %c0_10 = arith.constant 0 : index
      %c0_11 = arith.constant 0 : index
      %8 = vector.load %arg2[%c0_9, %c0_10, %c0_11] : memref<3x8x128xf32, #tpu.memory_space<vmem>>, vector<1x8x128xf32>
      %9 = vector.shape_cast %8 : vector<1x8x128xf32> to vector<8x128xf32>
      %10 = vector.extract_strided_slice %5 {offsets = [0, 0], sizes = [1, 128], strides = [1, 1]} : vector<3x128xf32> to vector<1x128xf32>
      %11 = vector.broadcast %10 : vector<1x128xf32> to vector<8x128xf32>
      %12 = arith.mulf %9, %11 : vector<8x128xf32>
      %13 = arith.addf %7, %12 : vector<8x128xf32>
      %c1 = arith.constant 1 : index
      %c0_12 = arith.constant 0 : index
      %c0_13 = arith.constant 0 : index
      %14 = vector.load %arg2[%c1, %c0_12, %c0_13] : memref<3x8x128xf32, #tpu.memory_space<vmem>>, vector<1x8x128xf32>
      %15 = vector.shape_cast %14 : vector<1x8x128xf32> to vector<8x128xf32>
      %16 = vector.extract_strided_slice %5 {offsets = [1, 0], sizes = [1, 128], strides = [1, 1]} : vector<3x128xf32> to vector<1x128xf32>
      %17 = vector.broadcast %16 : vector<1x128xf32> to vector<8x128xf32>
      %18 = arith.mulf %15, %17 : vector<8x128xf32>
      %19 = arith.addf %13, %18 : vector<8x128xf32>
      %c2 = arith.constant 2 : index
      %c0_14 = arith.constant 0 : index
      %c0_15 = arith.constant 0 : index
      %20 = vector.load %arg2[%c2, %c0_14, %c0_15] : memref<3x8x128xf32, #tpu.memory_space<vmem>>, vector<1x8x128xf32>
      %21 = vector.shape_cast %20 : vector<1x8x128xf32> to vector<8x128xf32>
      %22 = vector.extract_strided_slice %5 {offsets = [2, 0], sizes = [1, 128], strides = [1, 1]} : vector<3x128xf32> to vector<1x128xf32>
      %23 = vector.broadcast %22 : vector<1x128xf32> to vector<8x128xf32>
      %24 = arith.mulf %21, %23 : vector<8x128xf32>
      %25 = arith.addf %19, %24 : vector<8x128xf32>
      %26 = math.tanh %25 : vector<8x128xf32>
      %c1_16 = arith.constant 1 : index
      %c0_17 = arith.constant 0 : index
      %c0_18 = arith.constant 0 : index
      %27 = vector.load %arg5[%c1_16, %c0_17, %c0_18] : memref<4x8x128xf32, #tpu.memory_space<vmem>>, vector<1x8x128xf32>
      %28 = vector.shape_cast %27 : vector<1x8x128xf32> to vector<8x128xf32>
      %c0_19 = arith.constant 0 : index
      %c0_20 = arith.constant 0 : index
      %c0_21 = arith.constant 0 : index
      %29 = vector.load %arg3[%c0_19, %c0_20, %c0_21] : memref<24x8x128xf32, #tpu.memory_space<vmem>>, vector<1x8x128xf32>
      %30 = vector.shape_cast %29 : vector<1x8x128xf32> to vector<8x128xf32>
      %31 = vector.extract_strided_slice %26 {offsets = [0, 0], sizes = [1, 128], strides = [1, 1]} : vector<8x128xf32> to vector<1x128xf32>
      %32 = vector.broadcast %31 : vector<1x128xf32> to vector<8x128xf32>
      %33 = arith.mulf %30, %32 : vector<8x128xf32>
      %34 = arith.addf %28, %33 : vector<8x128xf32>
      %c1_22 = arith.constant 1 : index
      %c0_23 = arith.constant 0 : index
      %c0_24 = arith.constant 0 : index
      %35 = vector.load %arg3[%c1_22, %c0_23, %c0_24] : memref<24x8x128xf32, #tpu.memory_space<vmem>>, vector<1x8x128xf32>
      %36 = vector.shape_cast %35 : vector<1x8x128xf32> to vector<8x128xf32>
      %37 = vector.extract_strided_slice %26 {offsets = [1, 0], sizes = [1, 128], strides = [1, 1]} : vector<8x128xf32> to vector<1x128xf32>
      %38 = vector.broadcast %37 : vector<1x128xf32> to vector<8x128xf32>
      %39 = arith.mulf %36, %38 : vector<8x128xf32>
      %40 = arith.addf %34, %39 : vector<8x128xf32>
      %c2_25 = arith.constant 2 : index
      %c0_26 = arith.constant 0 : index
      %c0_27 = arith.constant 0 : index
      %41 = vector.load %arg3[%c2_25, %c0_26, %c0_27] : memref<24x8x128xf32, #tpu.memory_space<vmem>>, vector<1x8x128xf32>
      %42 = vector.shape_cast %41 : vector<1x8x128xf32> to vector<8x128xf32>
      %43 = vector.extract_strided_slice %26 {offsets = [2, 0], sizes = [1, 128], strides = [1, 1]} : vector<8x128xf32> to vector<1x128xf32>
      %44 = vector.broadcast %43 : vector<1x128xf32> to vector<8x128xf32>
      %45 = arith.mulf %42, %44 : vector<8x128xf32>
      %46 = arith.addf %40, %45 : vector<8x128xf32>
      %c3 = arith.constant 3 : index
      %c0_28 = arith.constant 0 : index
      %c0_29 = arith.constant 0 : index
      %47 = vector.load %arg3[%c3, %c0_28, %c0_29] : memref<24x8x128xf32, #tpu.memory_space<vmem>>, vector<1x8x128xf32>
      %48 = vector.shape_cast %47 : vector<1x8x128xf32> to vector<8x128xf32>
      %49 = vector.extract_strided_slice %26 {offsets = [3, 0], sizes = [1, 128], strides = [1, 1]} : vector<8x128xf32> to vector<1x128xf32>
      %50 = vector.broadcast %49 : vector<1x128xf32> to vector<8x128xf32>
      %51 = arith.mulf %48, %50 : vector<8x128xf32>
      %52 = arith.addf %46, %51 : vector<8x128xf32>
      %c4 = arith.constant 4 : index
      %c0_30 = arith.constant 0 : index
      %c0_31 = arith.constant 0 : index
      %53 = vector.load %arg3[%c4, %c0_30, %c0_31] : memref<24x8x128xf32, #tpu.memory_space<vmem>>, vector<1x8x128xf32>
      %54 = vector.shape_cast %53 : vector<1x8x128xf32> to vector<8x128xf32>
      %55 = vector.extract_strided_slice %26 {offsets = [4, 0], sizes = [1, 128], strides = [1, 1]} : vector<8x128xf32> to vector<1x128xf32>
      %56 = vector.broadcast %55 : vector<1x128xf32> to vector<8x128xf32>
      %57 = arith.mulf %54, %56 : vector<8x128xf32>
      %58 = arith.addf %52, %57 : vector<8x128xf32>
      %c5 = arith.constant 5 : index
      %c0_32 = arith.constant 0 : index
      %c0_33 = arith.constant 0 : index
      %59 = vector.load %arg3[%c5, %c0_32, %c0_33] : memref<24x8x128xf32, #tpu.memory_space<vmem>>, vector<1x8x128xf32>
      %60 = vector.shape_cast %59 : vector<1x8x128xf32> to vector<8x128xf32>
      %61 = vector.extract_strided_slice %26 {offsets = [5, 0], sizes = [1, 128], strides = [1, 1]} : vector<8x128xf32> to vector<1x128xf32>
      %62 = vector.broadcast %61 : vector<1x128xf32> to vector<8x128xf32>
      %63 = arith.mulf %60, %62 : vector<8x128xf32>
      %64 = arith.addf %58, %63 : vector<8x128xf32>
      %c6 = arith.constant 6 : index
      %c0_34 = arith.constant 0 : index
      %c0_35 = arith.constant 0 : index
      %65 = vector.load %arg3[%c6, %c0_34, %c0_35] : memref<24x8x128xf32, #tpu.memory_space<vmem>>, vector<1x8x128xf32>
      %66 = vector.shape_cast %65 : vector<1x8x128xf32> to vector<8x128xf32>
      %67 = vector.extract_strided_slice %26 {offsets = [6, 0], sizes = [1, 128], strides = [1, 1]} : vector<8x128xf32> to vector<1x128xf32>
      %68 = vector.broadcast %67 : vector<1x128xf32> to vector<8x128xf32>
      %69 = arith.mulf %66, %68 : vector<8x128xf32>
      %70 = arith.addf %64, %69 : vector<8x128xf32>
      %c7 = arith.constant 7 : index
      %c0_36 = arith.constant 0 : index
      %c0_37 = arith.constant 0 : index
      %71 = vector.load %arg3[%c7, %c0_36, %c0_37] : memref<24x8x128xf32, #tpu.memory_space<vmem>>, vector<1x8x128xf32>
      %72 = vector.shape_cast %71 : vector<1x8x128xf32> to vector<8x128xf32>
      %73 = vector.extract_strided_slice %26 {offsets = [7, 0], sizes = [1, 128], strides = [1, 1]} : vector<8x128xf32> to vector<1x128xf32>
      %74 = vector.broadcast %73 : vector<1x128xf32> to vector<8x128xf32>
      %75 = arith.mulf %72, %74 : vector<8x128xf32>
      %76 = arith.addf %70, %75 : vector<8x128xf32>
      %77 = math.tanh %76 : vector<8x128xf32>
      %c2_38 = arith.constant 2 : index
      %c0_39 = arith.constant 0 : index
      %c0_40 = arith.constant 0 : index
      %78 = vector.load %arg5[%c2_38, %c0_39, %c0_40] : memref<4x8x128xf32, #tpu.memory_space<vmem>>, vector<1x8x128xf32>
      %79 = vector.shape_cast %78 : vector<1x8x128xf32> to vector<8x128xf32>
      %c8 = arith.constant 8 : index
      %c0_41 = arith.constant 0 : index
      %c0_42 = arith.constant 0 : index
      %80 = vector.load %arg3[%c8, %c0_41, %c0_42] : memref<24x8x128xf32, #tpu.memory_space<vmem>>, vector<1x8x128xf32>
      %81 = vector.shape_cast %80 : vector<1x8x128xf32> to vector<8x128xf32>
      %82 = vector.extract_strided_slice %77 {offsets = [0, 0], sizes = [1, 128], strides = [1, 1]} : vector<8x128xf32> to vector<1x128xf32>
      %83 = vector.broadcast %82 : vector<1x128xf32> to vector<8x128xf32>
      %84 = arith.mulf %81, %83 : vector<8x128xf32>
      %85 = arith.addf %79, %84 : vector<8x128xf32>
      %c9 = arith.constant 9 : index
      %c0_43 = arith.constant 0 : index
      %c0_44 = arith.constant 0 : index
      %86 = vector.load %arg3[%c9, %c0_43, %c0_44] : memref<24x8x128xf32, #tpu.memory_space<vmem>>, vector<1x8x128xf32>
      %87 = vector.shape_cast %86 : vector<1x8x128xf32> to vector<8x128xf32>
      %88 = vector.extract_strided_slice %77 {offsets = [1, 0], sizes = [1, 128], strides = [1, 1]} : vector<8x128xf32> to vector<1x128xf32>
      %89 = vector.broadcast %88 : vector<1x128xf32> to vector<8x128xf32>
      %90 = arith.mulf %87, %89 : vector<8x128xf32>
      %91 = arith.addf %85, %90 : vector<8x128xf32>
      %c10 = arith.constant 10 : index
      %c0_45 = arith.constant 0 : index
      %c0_46 = arith.constant 0 : index
      %92 = vector.load %arg3[%c10, %c0_45, %c0_46] : memref<24x8x128xf32, #tpu.memory_space<vmem>>, vector<1x8x128xf32>
      %93 = vector.shape_cast %92 : vector<1x8x128xf32> to vector<8x128xf32>
      %94 = vector.extract_strided_slice %77 {offsets = [2, 0], sizes = [1, 128], strides = [1, 1]} : vector<8x128xf32> to vector<1x128xf32>
      %95 = vector.broadcast %94 : vector<1x128xf32> to vector<8x128xf32>
      %96 = arith.mulf %93, %95 : vector<8x128xf32>
      %97 = arith.addf %91, %96 : vector<8x128xf32>
      %c11 = arith.constant 11 : index
      %c0_47 = arith.constant 0 : index
      %c0_48 = arith.constant 0 : index
      %98 = vector.load %arg3[%c11, %c0_47, %c0_48] : memref<24x8x128xf32, #tpu.memory_space<vmem>>, vector<1x8x128xf32>
      %99 = vector.shape_cast %98 : vector<1x8x128xf32> to vector<8x128xf32>
      %100 = vector.extract_strided_slice %77 {offsets = [3, 0], sizes = [1, 128], strides = [1, 1]} : vector<8x128xf32> to vector<1x128xf32>
      %101 = vector.broadcast %100 : vector<1x128xf32> to vector<8x128xf32>
      %102 = arith.mulf %99, %101 : vector<8x128xf32>
      %103 = arith.addf %97, %102 : vector<8x128xf32>
      %c12 = arith.constant 12 : index
      %c0_49 = arith.constant 0 : index
      %c0_50 = arith.constant 0 : index
      %104 = vector.load %arg3[%c12, %c0_49, %c0_50] : memref<24x8x128xf32, #tpu.memory_space<vmem>>, vector<1x8x128xf32>
      %105 = vector.shape_cast %104 : vector<1x8x128xf32> to vector<8x128xf32>
      %106 = vector.extract_strided_slice %77 {offsets = [4, 0], sizes = [1, 128], strides = [1, 1]} : vector<8x128xf32> to vector<1x128xf32>
      %107 = vector.broadcast %106 : vector<1x128xf32> to vector<8x128xf32>
      %108 = arith.mulf %105, %107 : vector<8x128xf32>
      %109 = arith.addf %103, %108 : vector<8x128xf32>
      %c13 = arith.constant 13 : index
      %c0_51 = arith.constant 0 : index
      %c0_52 = arith.constant 0 : index
      %110 = vector.load %arg3[%c13, %c0_51, %c0_52] : memref<24x8x128xf32, #tpu.memory_space<vmem>>, vector<1x8x128xf32>
      %111 = vector.shape_cast %110 : vector<1x8x128xf32> to vector<8x128xf32>
      %112 = vector.extract_strided_slice %77 {offsets = [5, 0], sizes = [1, 128], strides = [1, 1]} : vector<8x128xf32> to vector<1x128xf32>
      %113 = vector.broadcast %112 : vector<1x128xf32> to vector<8x128xf32>
      %114 = arith.mulf %111, %113 : vector<8x128xf32>
      %115 = arith.addf %109, %114 : vector<8x128xf32>
      %c14 = arith.constant 14 : index
      %c0_53 = arith.constant 0 : index
      %c0_54 = arith.constant 0 : index
      %116 = vector.load %arg3[%c14, %c0_53, %c0_54] : memref<24x8x128xf32, #tpu.memory_space<vmem>>, vector<1x8x128xf32>
      %117 = vector.shape_cast %116 : vector<1x8x128xf32> to vector<8x128xf32>
      %118 = vector.extract_strided_slice %77 {offsets = [6, 0], sizes = [1, 128], strides = [1, 1]} : vector<8x128xf32> to vector<1x128xf32>
      %119 = vector.broadcast %118 : vector<1x128xf32> to vector<8x128xf32>
      %120 = arith.mulf %117, %119 : vector<8x128xf32>
      %121 = arith.addf %115, %120 : vector<8x128xf32>
      %c15 = arith.constant 15 : index
      %c0_55 = arith.constant 0 : index
      %c0_56 = arith.constant 0 : index
      %122 = vector.load %arg3[%c15, %c0_55, %c0_56] : memref<24x8x128xf32, #tpu.memory_space<vmem>>, vector<1x8x128xf32>
      %123 = vector.shape_cast %122 : vector<1x8x128xf32> to vector<8x128xf32>
      %124 = vector.extract_strided_slice %77 {offsets = [7, 0], sizes = [1, 128], strides = [1, 1]} : vector<8x128xf32> to vector<1x128xf32>
      %125 = vector.broadcast %124 : vector<1x128xf32> to vector<8x128xf32>
      %126 = arith.mulf %123, %125 : vector<8x128xf32>
      %127 = arith.addf %121, %126 : vector<8x128xf32>
      %128 = math.tanh %127 : vector<8x128xf32>
      %c3_57 = arith.constant 3 : index
      %c0_58 = arith.constant 0 : index
      %c0_59 = arith.constant 0 : index
      %129 = vector.load %arg5[%c3_57, %c0_58, %c0_59] : memref<4x8x128xf32, #tpu.memory_space<vmem>>, vector<1x8x128xf32>
      %130 = vector.shape_cast %129 : vector<1x8x128xf32> to vector<8x128xf32>
      %c16 = arith.constant 16 : index
      %c0_60 = arith.constant 0 : index
      %c0_61 = arith.constant 0 : index
      %131 = vector.load %arg3[%c16, %c0_60, %c0_61] : memref<24x8x128xf32, #tpu.memory_space<vmem>>, vector<1x8x128xf32>
      %132 = vector.shape_cast %131 : vector<1x8x128xf32> to vector<8x128xf32>
      %133 = vector.extract_strided_slice %128 {offsets = [0, 0], sizes = [1, 128], strides = [1, 1]} : vector<8x128xf32> to vector<1x128xf32>
      %134 = vector.broadcast %133 : vector<1x128xf32> to vector<8x128xf32>
      %135 = arith.mulf %132, %134 : vector<8x128xf32>
      %136 = arith.addf %130, %135 : vector<8x128xf32>
      %c17 = arith.constant 17 : index
      %c0_62 = arith.constant 0 : index
      %c0_63 = arith.constant 0 : index
      %137 = vector.load %arg3[%c17, %c0_62, %c0_63] : memref<24x8x128xf32, #tpu.memory_space<vmem>>, vector<1x8x128xf32>
      %138 = vector.shape_cast %137 : vector<1x8x128xf32> to vector<8x128xf32>
      %139 = vector.extract_strided_slice %128 {offsets = [1, 0], sizes = [1, 128], strides = [1, 1]} : vector<8x128xf32> to vector<1x128xf32>
      %140 = vector.broadcast %139 : vector<1x128xf32> to vector<8x128xf32>
      %141 = arith.mulf %138, %140 : vector<8x128xf32>
      %142 = arith.addf %136, %141 : vector<8x128xf32>
      %c18 = arith.constant 18 : index
      %c0_64 = arith.constant 0 : index
      %c0_65 = arith.constant 0 : index
      %143 = vector.load %arg3[%c18, %c0_64, %c0_65] : memref<24x8x128xf32, #tpu.memory_space<vmem>>, vector<1x8x128xf32>
      %144 = vector.shape_cast %143 : vector<1x8x128xf32> to vector<8x128xf32>
      %145 = vector.extract_strided_slice %128 {offsets = [2, 0], sizes = [1, 128], strides = [1, 1]} : vector<8x128xf32> to vector<1x128xf32>
      %146 = vector.broadcast %145 : vector<1x128xf32> to vector<8x128xf32>
      %147 = arith.mulf %144, %146 : vector<8x128xf32>
      %148 = arith.addf %142, %147 : vector<8x128xf32>
      %c19 = arith.constant 19 : index
      %c0_66 = arith.constant 0 : index
      %c0_67 = arith.constant 0 : index
      %149 = vector.load %arg3[%c19, %c0_66, %c0_67] : memref<24x8x128xf32, #tpu.memory_space<vmem>>, vector<1x8x128xf32>
      %150 = vector.shape_cast %149 : vector<1x8x128xf32> to vector<8x128xf32>
      %151 = vector.extract_strided_slice %128 {offsets = [3, 0], sizes = [1, 128], strides = [1, 1]} : vector<8x128xf32> to vector<1x128xf32>
      %152 = vector.broadcast %151 : vector<1x128xf32> to vector<8x128xf32>
      %153 = arith.mulf %150, %152 : vector<8x128xf32>
      %154 = arith.addf %148, %153 : vector<8x128xf32>
      %c20 = arith.constant 20 : index
      %c0_68 = arith.constant 0 : index
      %c0_69 = arith.constant 0 : index
      %155 = vector.load %arg3[%c20, %c0_68, %c0_69] : memref<24x8x128xf32, #tpu.memory_space<vmem>>, vector<1x8x128xf32>
      %156 = vector.shape_cast %155 : vector<1x8x128xf32> to vector<8x128xf32>
      %157 = vector.extract_strided_slice %128 {offsets = [4, 0], sizes = [1, 128], strides = [1, 1]} : vector<8x128xf32> to vector<1x128xf32>
      %158 = vector.broadcast %157 : vector<1x128xf32> to vector<8x128xf32>
      %159 = arith.mulf %156, %158 : vector<8x128xf32>
      %160 = arith.addf %154, %159 : vector<8x128xf32>
      %c21 = arith.constant 21 : index
      %c0_70 = arith.constant 0 : index
      %c0_71 = arith.constant 0 : index
      %161 = vector.load %arg3[%c21, %c0_70, %c0_71] : memref<24x8x128xf32, #tpu.memory_space<vmem>>, vector<1x8x128xf32>
      %162 = vector.shape_cast %161 : vector<1x8x128xf32> to vector<8x128xf32>
      %163 = vector.extract_strided_slice %128 {offsets = [5, 0], sizes = [1, 128], strides = [1, 1]} : vector<8x128xf32> to vector<1x128xf32>
      %164 = vector.broadcast %163 : vector<1x128xf32> to vector<8x128xf32>
      %165 = arith.mulf %162, %164 : vector<8x128xf32>
      %166 = arith.addf %160, %165 : vector<8x128xf32>
      %c22 = arith.constant 22 : index
      %c0_72 = arith.constant 0 : index
      %c0_73 = arith.constant 0 : index
      %167 = vector.load %arg3[%c22, %c0_72, %c0_73] : memref<24x8x128xf32, #tpu.memory_space<vmem>>, vector<1x8x128xf32>
      %168 = vector.shape_cast %167 : vector<1x8x128xf32> to vector<8x128xf32>
      %169 = vector.extract_strided_slice %128 {offsets = [6, 0], sizes = [1, 128], strides = [1, 1]} : vector<8x128xf32> to vector<1x128xf32>
      %170 = vector.broadcast %169 : vector<1x128xf32> to vector<8x128xf32>
      %171 = arith.mulf %168, %170 : vector<8x128xf32>
      %172 = arith.addf %166, %171 : vector<8x128xf32>
      %c23 = arith.constant 23 : index
      %c0_74 = arith.constant 0 : index
      %c0_75 = arith.constant 0 : index
      %173 = vector.load %arg3[%c23, %c0_74, %c0_75] : memref<24x8x128xf32, #tpu.memory_space<vmem>>, vector<1x8x128xf32>
      %174 = vector.shape_cast %173 : vector<1x8x128xf32> to vector<8x128xf32>
      %175 = vector.extract_strided_slice %128 {offsets = [7, 0], sizes = [1, 128], strides = [1, 1]} : vector<8x128xf32> to vector<1x128xf32>
      %176 = vector.broadcast %175 : vector<1x128xf32> to vector<8x128xf32>
      %177 = arith.mulf %174, %176 : vector<8x128xf32>
      %178 = arith.addf %172, %177 : vector<8x128xf32>
      %179 = math.tanh %178 : vector<8x128xf32>
      %180 = arith.mulf %0, %179 : vector<8x128xf32>
      %cst = arith.constant dense<0.000000e+00> : vector<128xf32>
      %181 = vector.multi_reduction <add>, %180, %cst [0] : vector<8x128xf32> to vector<128xf32>
      %182 = vector.shape_cast %181 : vector<128xf32> to vector<1x128xf32>
      %183 = vector.broadcast %1 : vector<1x1xf32> to vector<1x128xf32>
      %184 = arith.addf %182, %183 : vector<1x128xf32>
      %185 = arith.index_cast %arg8 : i32 to index
      %c0_76 = arith.constant 0 : index
      %c0_77 = arith.constant 0 : index
      %186 = vector.load %arg7[%185, %c0_76, %c0_77] : memref<2x1x128xf32, #tpu.memory_space<vmem>>, vector<1x1x128xf32>
      %187 = vector.shape_cast %186 : vector<1x1x128xf32> to vector<1x128xf32>
      %188 = vector.shape_cast %184 : vector<1x128xf32> to vector<1x1x128xf32>
      tpu.vector_store %arg7[%185, %c0_76, %c0_77], %188 {strides = array<i32>} : memref<2x1x128xf32, #tpu.memory_space<vmem>>, vector<1x1x128xf32>,
    }
    %c2_i32_3 = arith.constant 2 : i32
    return
  }
  func.func @transform_0(%arg0: i32) -> (i32, i32, i32) {
    %c0_i32 = arith.constant 0 : i32
    %c0_i32_0 = arith.constant 0 : i32
    %c0_i32_1 = arith.constant 0 : i32
    return %arg0, %c0_i32, %c0_i32_0 : i32, i32, i32
  }
  func.func @transform_1(%arg0: i32) -> (i32, i32, i32) {
    %c0_i32 = arith.constant 0 : i32
    %c0_i32_0 = arith.constant 0 : i32
    %c0_i32_1 = arith.constant 0 : i32
    %c0_i32_2 = arith.constant 0 : i32
    return %c0_i32, %c0_i32_0, %c0_i32_1 : i32, i32, i32
  }
  func.func @transform_2(%arg0: i32) -> (i32, i32, i32) {
    %c0_i32 = arith.constant 0 : i32
    %c0_i32_0 = arith.constant 0 : i32
    %c0_i32_1 = arith.constant 0 : i32
    %c0_i32_2 = arith.constant 0 : i32
    return %c0_i32, %c0_i32_0, %c0_i32_1 : i32, i32, i32
  }
  func.func @transform_3(%arg0: i32) -> (i32, i32) {
    %c0_i32 = arith.constant 0 : i32
    %c0_i32_0 = arith.constant 0 : i32
    %c0_i32_1 = arith.constant 0 : i32
    return %c0_i32, %c0_i32_0 : i32, i32
  }
  func.func @transform_4(%arg0: i32) -> (i32, i32, i32) {
    %c0_i32 = arith.constant 0 : i32
    %c0_i32_0 = arith.constant 0 : i32
    %c0_i32_1 = arith.constant 0 : i32
    %c0_i32_2 = arith.constant 0 : i32
    return %c0_i32, %c0_i32_0, %c0_i32_1 : i32, i32, i32
  }
  func.func @transform_5(%arg0: i32) -> (i32, i32) {
    %c0_i32 = arith.constant 0 : i32
    %c0_i32_0 = arith.constant 0 : i32
    %c0_i32_1 = arith.constant 0 : i32
    return %c0_i32, %c0_i32_0 : i32, i32
  }
  func.func @transform_6(%arg0: i32) -> (i32, i32, i32) {
    %c0_i32 = arith.constant 0 : i32
    %c0_i32_0 = arith.constant 0 : i32
    %c0_i32_1 = arith.constant 0 : i32
    return %arg0, %c0_i32, %c0_i32_0 : i32, i32, i32
  }
}

</mosaic_0001>

<bundles_post_ra>
// kernel: tpu_custom_call.1
= control target key start
LH: loop header
LB: loop body
LE: loop exit
PB: predicated region body
PF: predicated region fallthrough
CT: control target
= control target key end

     0   :  { %s1432_s0 = inlined_call_operand.hbm [shape: f32[3,3,128], index: 0, kind: input, shape index: {}]   ;;  %s1433_s1 = inlined_call_operand.hbm [shape: f32[3,8,128], index: 1, kind: input, shape index: {}]   ;;  %s1434_s2 = inlined_call_operand.hbm [shape: f32[24,8,128], index: 2, kind: input, shape index: {}]   ;;  %s1435_s3 = inlined_call_operand.vmem [shape: f32[8,128], index: 3, kind: input, shape index: {}]   ;;  %s1436_s4 = inlined_call_operand.hbm [shape: f32[4,8,128], index: 4, kind: input, shape index: {}]   ;;  %s1437_s5 = inlined_call_operand.<no memory space> [shape: f32[1,1], index: 5, kind: input, shape index: {}]   ;;  %s1438_s6 = inlined_call_operand.hbm [shape: f32[3,1,128], index: 6, kind: output, shape index: {}]  }
   0x1   :  { %1444 = sst [smem:[#allocation18_spill]] %s1433_s1  ;;  %v11_v0 = vstv %s1437_s5 }
   0x2   :  { %12 = vst [vmem:[#allocation2] sm:$0x1] %v11_v0 }
   0x3   :  { %13 = vsyncpa [#allocation4], 0 }
   0x4   :  { %15 = vsyncpa [#allocation4 + $0x1], 0 }
   0x5   :  { %16 = vsyncpa [#allocation7], 0 }
   0x6   :  { %17 = vsyncpa [#allocation10], 0 }
   0x7   :  { %18 = vsyncpa [#allocation5], 0 }
   0x8   :  { %20 = vsyncpa [#allocation5 + $0x1], 0  ;;  %s1085_s23 = smov 0   ;;  %s1087_s24 = smov 0  }
   0x9   :  { %s1089_s25 = smov 0   ;;  %s1091_s26 = smov 0  }
   0xa LB: > { %s1106_s5 = sadd.s32 4294967295, %s1029_s26   ;;  %s716_s27 = sadd.s32 4294967294, %s1029_s26   ;;  %s1029_s26 = sphi %s1091_s26, %s1464_s26   ;;  %s1025_s25 = sphi %s1089_s25, %s1468_s25   ;;  %s1021_s24 = sphi %s1087_s24, %s1467_s24   ;;  %s1017_s23 = sphi %s1085_s23, %s1466_s23  }
   0xb   : > { %s1110_s28 = sadd.s32 1, %s1029_s26   ;;  %s33_s29 = sadd.s32 1, %s1025_s25 }
   0xc   : > { %1445 = sst [smem:[#allocation16_spill]] %s1110_s28  ;;  %s30_s30 = ssub.s32 %s1029_s26, %s1110_s28 }
   0xd   : > { %p40_p0 = scmp.ne.s32.totalorder %s1025_s25, %s1021_s24  ;;  %p31_p1 = scmp.eq.s32.totalorder %s30_s30, 0 }
   0xe   : > { %p41_p2 = scmp.eq.s32.totalorder %s1029_s26, 0  ;;  %p46_p3 = scmp.ne.s32.totalorder %s1021_s24, %s1017_s23 }
   0xf   : > { %p1439_p4 = scmp.eq.s32.totalorder %s1106_s5, 0  ;;  %p175_p7 = scmp.eq.s32.totalorder %s1106_s5, 1 }
  0x10   : > { %s1122_s7 = scalar_select %p31_p1, %s1025_s25, %s33_s29  }
  0x11   : > { %p1124_p5 = por %p41_p2, %p40_p0  ;;  %p1130_p6 = por %p1439_p4, %p46_p3 }
  0x12   : > { %1446 = sst [smem:[#allocation17_spill]] %s1122_s7  ;;  %p181_p8 = scmp.eq.s32.totalorder %s716_s27, 1 }
  0x13   : > { %s1447_s8 = scalar_select %p1124_p5, 1, 0 }
  0x14   : > { %s1448_s9 = scalar_select %p1130_p6, 1, 0 }
  0x15   : > { %p717_p9 = scmp.ge.s32.totalorder %s1029_s26, 1  ;;  %p188_p10 = scmp.lt.s32.totalorder %s1029_s26, 3 }
  0x16   : > { %p1137_p11 = por %p175_p7, %p40_p0  ;;  %p1141_p12 = por %p181_p8, %p46_p3 }
  0x17   : > { %p1145_p13 = pnand %p717_p9, %p188_p10  ;;  %s1035_s13 = smov [#allocation6]  }
  0x18   : > { %s1449_s10 = scalar_select %p1137_p11, 1, 0 }
  0x19   : > { %s1450_s11 = scalar_select %p1141_p12, 1, 0 }
  0x1a   : > { %s1451_s12 = scalar_select %p1145_p13, 1, 0 }
  0x1b   : > { %p759_p1 = pneg %p1145_p13  ;;  %s200_s14 = sshll.u32 %s1035_s13, 4  ;;  %s201_s14 = int_to_ptr.vmem [resolvable:$true] %s200_s14 }
  0x1c   : > { %s1036_s16 = smov [#allocation8]   ;;  %s1453_s1 = sld [smem:[#allocation18_spill]] }
  0x1d   : > { %p1153_p2 = pnand %p759_p1, %p1439_p4  ;;  %s213_s17 = sshll.u32 %s1036_s16, 4  ;;  %s1157_s17 = int_to_ptr.vmem [resolvable:$true] %s213_s17 }
  0x1f   : > { %p1167_p3 = pneg %p1153_p2 }
  0x22   : > { %s839_s20 = scalar_lea.hbm %s1453_s1, 384 }
  0x23   : > { %p840_p0 = scmp.ne.s32.totalorder %s1453_s1, %s839_s20  ;;  %p846_p9 = scmp.lt.u32.totalorder %s839_s20, %s1453_s1 }
  0x25   : > { %p842_p7 = pnand %p1167_p3, %p840_p0 }
  0x27   : > { %p843_p8 = pneg %p842_p7 }
  0x29   : > { %p848_p10 = pnand %p846_p9, %p843_p8 }
  0x2b   : > { %851 = shalt.err (!%p848_p10)
}
  0x2c   : > { %s852_s13 = scalar_lea.vmem %s201_s14, 384  ;;  %p860_p11 = scmp.lt.s32.totalorder %s201_s14, %s201_s14 }
  0x2d   : > { %p853_p1 = scmp.ne.s32.totalorder %s201_s14, %s852_s13  ;;  %p861_p6 = scmp.lt.s32.totalorder %s852_s13, %s852_s13 }
  0x2f   : > { %p855_p4 = pnand %p853_p1, %p1167_p3  ;;  %p862_p13 = por %p861_p6, %p860_p11 }
  0x31   : > { %p856_p12 = pneg %p855_p4 }
  0x33   : > { %p863_p5 = pnand %p862_p13, %p856_p12 }
  0x35   : > { %866 = shalt.err (!%p863_p5)
}
  0x36   : > { %s1037_s16 = smov 128   ;;  %s1038_s18 = smov 8  }
  0x37   : > { %762 = dma.hbm_to_vmem [thread:$0]  (!%p1153_p2), %s1453_s1, 384, %s201_s14, [#allocation7], %s1037_s16, %s1037_s16, %s1038_s18  }
  0x38   : > { %s867_s29 = scalar_lea.hbm %s1434_s2, 3072 }
  0x39   : > { %p868_p4 = scmp.ne.s32.totalorder %s1434_s2, %s867_s29  ;;  %p874_p11 = scmp.lt.u32.totalorder %s867_s29, %s1434_s2 }
  0x3b   : > { %p870_p5 = pnand %p868_p4, %p1167_p3 }
  0x3d   : > { %p871_p6 = pneg %p870_p5 }
  0x3f   : > { %p876_p12 = pnand %p874_p11, %p871_p6 }
  0x41   : > { %879 = shalt.err (!%p876_p12)
}
  0x42   : > { %s880_s14 = scalar_lea.vmem %s1157_s17, 3072  ;;  %p888_p8 = scmp.lt.s32.totalorder %s1157_s17, %s1157_s17 }
  0x43   : > { %p881_p13 = scmp.ne.s32.totalorder %s1157_s17, %s880_s14  ;;  %p889_p9 = scmp.lt.s32.totalorder %s880_s14, %s880_s14 }
  0x45   : > { %p883_p0 = pnand %p881_p13, %p1167_p3  ;;  %p890_p10 = por %p889_p9, %p888_p8 }
  0x47   : > { %p884_p7 = pneg %p883_p0 }
  0x49   : > { %p891_p1 = pnand %p890_p10, %p884_p7 }
  0x4b   : > { %894 = shalt.err (!%p891_p1)
}
  0x4c   : > { %765 = dma.hbm_to_vmem [thread:$0]  (!%p1153_p2), %s1434_s2, 3072, %s1157_s17, [#allocation7], %s1037_s16, %s1037_s16, %s1038_s18  }
  0x4d   : > { %s1039_s19 = smov [#allocation9]   ;;  %s895_s29 = scalar_lea.hbm %s1436_s4, 512 }
  0x4e   : > { %s229_s20 = sshll.u32 %s1039_s19, 4  ;;  %p896_p4 = scmp.ne.s32.totalorder %s1436_s4, %s895_s29  ;;  %s230_s20 = int_to_ptr.vmem [resolvable:$true] %s229_s20 }
  0x4f   : > { %p902_p11 = scmp.lt.u32.totalorder %s895_s29, %s1436_s4 }
  0x50   : > { %p898_p5 = pnand %p896_p4, %p1167_p3 }
  0x52   : > { %p899_p6 = pneg %p898_p5 }
  0x54   : > { %p904_p12 = pnand %p902_p11, %p899_p6 }
  0x56   : > { %907 = shalt.err (!%p904_p12)
}
  0x57   : > { %s908_s17 = scalar_lea.vmem %s230_s20, 512  ;;  %p916_p8 = scmp.lt.s32.totalorder %s230_s20, %s230_s20 }
  0x58   : > { %p909_p13 = scmp.ne.s32.totalorder %s230_s20, %s908_s17  ;;  %p917_p9 = scmp.lt.s32.totalorder %s908_s17, %s908_s17 }
  0x5a   : > { %p911_p0 = pnand %p909_p13, %p1167_p3  ;;  %p918_p10 = por %p917_p9, %p916_p8 }
  0x5c   : > { %p912_p7 = pneg %p911_p0 }
  0x5e   : > { %p919_p1 = pnand %p918_p10, %p912_p7 }
  0x60   : > { %922 = shalt.err (!%p919_p1)
}
  0x61   : > { %768 = dma.hbm_to_vmem [thread:$0]  (!%p1153_p2), %s1436_s4, 512, %s230_s20, [#allocation10], %s1037_s16, %s1037_s16, %s1038_s18  }
  0x62   : > { %p721_p4 = scmp.ge.s32.totalorder %s1029_s26, 2 }
  0x63   : > { %p1455_p3 = scmp.ne.s32.totalorder (!%p721_p4), %s1447_s8, 0 }
  0x64   : > { %242 = sbr.rel (%p721_p4) target bundleno = 142 (0x8e), region = 36 }
  0x6b   : > { %245 = sbr.rel (!%p1455_p3) target bundleno = 142 (0x8e), region = 40  ;;  %s246_s27 = sand.u32 (%p1455_p3), 1, %s1025_s25  }
  0x6c   : > { %s723_s7 = sshll.u32 (%p1455_p3), %s1029_s26, 1  ;;  %s722_s15 = sshll.u32 (%p1455_p3), %s246_s27, 3 }
  0x6d   : > { %s252_s19 = ssub.s32 (%p1455_p3), 3, %s723_s7  ;;  %s1243_s18 = scalar_lea.sflag (%p1455_p3), [#allocation4], %s246_s27 }
  0x6e   : > { %p253_p5 = scmp.lt.s32.totalorder (%p1455_p3), %s252_s19, 2  ;;  %s250_s20 = scalar_lea.vmem (%p1455_p3), [#allocation3], %s722_s15 }
  0x72   : > { %s1470_s19 = smov (!%p253_p5, %s252_s19), 2 }
  0x73   : > { %s1240_s21 = sshll.u32 %s1470_s19, 6 }
  0x74   : > { %s257_s16 = ssub.s32 128, %s1240_s21 }
  0x75   : > { %258 = vsyncadd %s1243_s18, %s257_s16  ;;  %p725_p2 = scmp.ne.s32.totalorder %s1240_s21, 0  ;;  %s743_s8 = sshll.u32 %s1029_s26, 7 }
  0x76   : > { %s1251_s30 = scalar_lea.hbm %s1432_s0, %s743_s8  ;;  %s263_s13 = sshll.u32 %s250_s20, 4  ;;  %s1253_s13 = int_to_ptr.vmem [resolvable:$true] %s263_s13 }
  0x77   : > { %s923_s14 = scalar_lea.hbm %s1251_s30, %s1240_s21  ;;  %s927_s28 = scalar_lea.hbm %s1432_s0, 192 }
  0x78   : > { %p924_p6 = scmp.ne.s32.totalorder %s1251_s30, %s923_s14  ;;  %p928_p13 = scmp.lt.u32.totalorder %s1251_s30, %s1432_s0 }
  0x79   : > { %p929_p0 = scmp.lt.u32.totalorder %s927_s28, %s923_s14  ;;  %p931_p8 = scmp.lt.u32.totalorder %s923_s14, %s1251_s30 }
  0x7a   : > { %p925_p11 = pnand %p924_p6, %p725_p2 }
  0x7b   : > { %p930_p7 = por %p929_p0, %p928_p13 }
  0x7c   : > { %p926_p12 = pneg %p925_p11 }
  0x7d   : > { %p932_p9 = por %p931_p8, %p930_p7 }
  0x7f   : > { %p933_p10 = pnand %p932_p9, %p926_p12 }
  0x81   : > { %936 = shalt.err (!%p933_p10)
}
  0x82   : > { %s937_s15 = scalar_lea.vmem %s1253_s13, %s1240_s21  ;;  %s1040_s19 = smov [#allocation3]  }
  0x83   : > { %p938_p1 = scmp.ne.s32.totalorder %s1253_s13, %s937_s15  ;;  %s941_s16 = sshll.u32 %s1040_s19, 4  ;;  %s942_s16 = int_to_ptr.vmem [resolvable:$false] %s941_s16 }
  0x84   : > { %s943_s20 = scalar_lea.vmem %s942_s16, 256  ;;  %p944_p6 = scmp.lt.s32.totalorder %s1253_s13, %s942_s16 }
  0x85   : > { %p939_p3 = pnand %p938_p1, %p725_p2  ;;  %p945_p11 = scmp.lt.s32.totalorder %s943_s20, %s937_s15 }
  0x87   : > { %p940_p5 = pneg %p939_p3  ;;  %p946_p13 = por %p945_p11, %p944_p6 }
  0x89   : > { %p947_p0 = pnand %p946_p13, %p940_p5 }
  0x8b   : > { %950 = shalt.err (!%p947_p0)
}
  0x8c   : > { %s1041_s8 = smov 64   ;;  %s1042_s22 = smov 4  }
  0x8d   : > { %269 = dma.hbm_to_vmem [thread:$0]  (%p725_p2), %s1251_s30, %s1240_s21, %s1253_s13, %s1243_s18, %s1041_s8, %s1041_s8, %s1042_s22  }
  0x8e PF: > { %p1456_p12 = scmp.ne.s32.totalorder %s1451_s12, 0 }
  0x8f   : > { %s1283_s29 = sand.u32 (!%p1456_p12), 1, %s1021_s24   ;;  %p1457_p7 = scmp.ne.s32.totalorder (!%p1456_p12), %s1448_s9, 0 }
  0x90   : > { %275 = sbr.rel (%p1456_p12) target bundleno = 332 (0x14c), region = 44  ;;  %s730_s14 = sshll.u32 (!%p1456_p12), %s1283_s29, 3 }
  0x91   : > { %s278_s17 = scalar_lea.sflag (!%p1456_p12), [#allocation4], %s1283_s29  ;;  %s1287_s1 = scalar_lea.vmem (!%p1456_p12), [#allocation3], %s730_s14 }
  0x97   : > { %1000 = dma.done.wait (%p1457_p7), %s278_s17, 128  }
  0x98   : > { %1002 = vsyncadd (%p1457_p7), %s278_s17, 4294967168  ;;  %p1458_p2 = scmp.eq.s32.totalorder %s1106_s5, 0 }
  0x9a   : > { %1004 = dma.done.wait (%p1458_p2), [#allocation7], 3456   ;;  %p1459_p8 = pmov %p1458_p2 }
  0x9b   : > { %p1460_p9 = pmov %p1458_p2 }
  0x9c   : > { %1006 = vsyncadd (%p1459_p8), [#allocation7], 4294963840 }
  0x9d   : > { %1008 = dma.done.wait (%p1460_p9), [#allocation10], 512   ;;  %p1461_p10 = pmov %p1458_p2 }
  0x9e   : > { %s734_s12 = sshll.u32 %s1283_s29, 1  ;;  %v1305_v1 = vld [vmem:[%s1435_s3] sm:$0xff]  ;;  %s1311_s30 = smov 0  }
  0x9f   : > { %1010 = vsyncadd (%p1461_p10), [#allocation10], 4294966784  ;;  %v1307_v2 = vld [vmem:[#allocation2] sm:$0x1]  ;;  %s1309_s9 = scalar_lea.vmem [#allocation11], %s734_s12 }
  0xa0 LB: >> { %v345_v3 = vlaneseq  ;;  %v1043_v4 = vmov 0   ;;  %s735_s13 = sshll.u32 %s1033_s30, 2  ;;  %v344_v10 = vld [vmem:[#allocation6] sm:$0xff]  ;;  %v352_v11 = vld [vmem:[#allocation6 + $0x8] sm:$0xff]  ;;  %v343_v15 = vld [vmem:[#allocation9] sm:$0xff]  ;;  %s585_s27 = scalar_lea.vmem %s1309_s9, %s1033_s30 [#allocation11]  ;;  %s1033_s30 = sphi %s1311_s30, %s339_s30  }
  0xa1   : >> { %830 = vset.pattern.permute.xlu0 %v1043_v4  ;;  %s341_s28 = scalar_lea.vmem %s1287_s1, %s735_s13 [#allocation3]  ;;  %v360_v16 = vld [vmem:[#allocation6 + $0x10] sm:$0xff]  ;;  %v370_v25 = vld [vmem:[#allocation8] sm:$0xff]  ;;  %v378_v26 = vld [vmem:[#allocation8 + $0x8] sm:$0xff]  ;;  %s339_s30 = sadd.s32 1, %s1033_s30  }
  0xa2   : >> { %577 = vperm.xlu0 %830, %v1307_v2   ;;  %v346_v5 = vshrl.u32 %v345_v3, 7  ;;  %v342_v6 = vld [vmem:[%s341_s28] sm:$0x7]  ;;  %v369_v31 = vld [vmem:[#allocation9 + $0x8] sm:$0xff]  ;;  %v402_v42 = vld [vmem:[#allocation8 + $0x20] sm:$0xff]  ;;  %p336_p1 = scmp.ge.s32.totalorder %s339_s30, 2  }
  0xa3   : >> { %v386_v32 = vld [vmem:[#allocation8 + $0x10] sm:$0xff]  ;;  %v394_v37 = vld [vmem:[#allocation8 + $0x18] sm:$0xff]  ;;  %v410_v47 = vld [vmem:[#allocation8 + $0x28] sm:$0xff]  ;;  %s588_s7 = scalar_lea.sflag (%p336_p1), [#allocation5], %s1283_s29  ;;  %p1462_p3 = scmp.ne.s32.totalorder (%p336_p1), %s1449_s10, 0 }
  0xa4   : >> { %v1319_v7 = vsub.s32 0, %v346_v5  ;;  %v1321_v8 = vsub.s32 1, %v346_v5  ;;  %v1323_v9 = vsub.s32 2, %v346_v5  ;;  %v1328_v23 = vsub.s32 3, %v346_v5  ;;  %v418_v51 = vld [vmem:[#allocation8 + $0x30] sm:$0xff]  ;;  %v426_v55 = vld [vmem:[#allocation8 + $0x38] sm:$0xff] }
  0xa5   : >> { %v1333_v30 = vsub.s32 4, %v346_v5  ;;  %v1336_v36 = vsub.s32 5, %v346_v5  ;;  %v1339_v41 = vsub.s32 6, %v346_v5  ;;  %v1342_v46 = vsub.s32 7, %v346_v5  ;;  %v437_v63 = vld [vmem:[#allocation8 + $0x40] sm:$0xff]  ;;  %v445_v0 = vld [vmem:[#allocation8 + $0x48] sm:$0xff] }
  0xa6   : >> { %v348_v12 = vrot.slane %v342_v6, %v1319_v7  ;;  %v356_v13 = vrot.slane %v342_v6, %v1321_v8  ;;  %v364_v14 = vrot.slane %v342_v6, %v1323_v9  ;;  %v435_v6 = vld [vmem:[#allocation9 + $0x10] sm:$0xff] }
  0xa8   : >> { %v349_v17 = vmul.f32 %v348_v12, %v344_v10  ;;  %v357_v18 = vmul.f32 %v356_v13, %v352_v11  ;;  %v365_v20 = vmul.f32 %v364_v14, %v360_v16  ;;  %v453_v10 = vld [vmem:[#allocation8 + $0x50] sm:$0xff]  ;;  %v461_v14 = vld [vmem:[#allocation8 + $0x58] sm:$0xff] }
  0xaa   : >> { %v350_v19 = vadd.f32 %v349_v17, %v343_v15 }
  0xac   : >> { %v358_v21 = vadd.f32 %v357_v18, %v350_v19  ;;  %v469_v18 = vld [vmem:[#allocation8 + $0x60] sm:$0xff] }
  0xae   : >> { %v366_v22 = vadd.f32 %v365_v20, %v358_v21 }
  0xb0   : >> { %831 = vtanh.f32 %v366_v22  ;;  %v477_v22 = vld [vmem:[#allocation8 + $0x68] sm:$0xff] }
  0xba   : >> { %v832_v24 = vpop.eup %831 }
  0xbb   : >> { %v374_v27 = vrot.slane %v832_v24, %v1319_v7  ;;  %v382_v28 = vrot.slane %v832_v24, %v1321_v8  ;;  %v390_v29 = vrot.slane %v832_v24, %v1323_v9  ;;  %v398_v35 = vrot.slane %v832_v24, %v1328_v23 }
  0xbc   : >> { %v406_v40 = vrot.slane %v832_v24, %v1333_v30  ;;  %v414_v45 = vrot.slane %v832_v24, %v1336_v36  ;;  %v422_v50 = vrot.slane %v832_v24, %v1339_v41  ;;  %v430_v54 = vrot.slane %v832_v24, %v1342_v46 }
  0xbd   : >> { %v375_v33 = vmul.f32 %v374_v27, %v370_v25  ;;  %v383_v34 = vmul.f32 %v382_v28, %v378_v26  ;;  %v391_v39 = vmul.f32 %v390_v29, %v386_v32  ;;  %v399_v44 = vmul.f32 %v398_v35, %v394_v37  ;;  %v485_v27 = vld [vmem:[#allocation8 + $0x70] sm:$0xff]  ;;  %v493_v32 = vld [vmem:[#allocation8 + $0x78] sm:$0xff] }
  0xbe   : >> { %v407_v49 = vmul.f32 %v406_v40, %v402_v42  ;;  %v415_v53 = vmul.f32 %v414_v45, %v410_v47  ;;  %v423_v57 = vmul.f32 %v422_v50, %v418_v51  ;;  %v431_v59 = vmul.f32 %v430_v54, %v426_v55  ;;  %v504_v42 = vld [vmem:[#allocation8 + $0x80] sm:$0xff] }
  0xbf   : >> { %v376_v38 = vadd.f32 %v375_v33, %v369_v31 }
  0xc1   : >> { %v384_v43 = vadd.f32 %v383_v34, %v376_v38 }
  0xc3   : >> { %v392_v48 = vadd.f32 %v391_v39, %v384_v43  ;;  %v512_v43 = vld [vmem:[#allocation8 + $0x88] sm:$0xff] }
  0xc5   : >> { %v400_v52 = vadd.f32 %v399_v44, %v392_v48  ;;  %v502_v48 = vld [vmem:[#allocation9 + $0x18] sm:$0xff] }
  0xc7   : >> { %v408_v56 = vadd.f32 %v407_v49, %v400_v52  ;;  %v520_v49 = vld [vmem:[#allocation8 + $0x90] sm:$0xff] }
  0xc9   : >> { %v416_v58 = vadd.f32 %v415_v53, %v408_v56  ;;  %v528_v53 = vld [vmem:[#allocation8 + $0x98] sm:$0xff] }
  0xcb   : >> { %v424_v60 = vadd.f32 %v423_v57, %v416_v58  ;;  %v536_v57 = vld [vmem:[#allocation8 + $0xa0] sm:$0xff] }
  0xcd   : >> { %v432_v61 = vadd.f32 %v431_v59, %v424_v60 }
  0xcf   : >> { %833 = vtanh.f32 %v432_v61  ;;  %v544_v61 = vld [vmem:[#allocation8 + $0xa8] sm:$0xff] }
  0xd9   : >> { %v834_v62 = vpop.eup %833 }
  0xda   : >> { %v441_v3 = vrot.slane %v834_v62, %v1319_v7  ;;  %v449_v4 = vrot.slane %v834_v62, %v1321_v8  ;;  %v457_v5 = vrot.slane %v834_v62, %v1323_v9  ;;  %v465_v13 = vrot.slane %v834_v62, %v1328_v23 }
  0xdb   : >> { %v473_v17 = vrot.slane %v834_v62, %v1333_v30  ;;  %v481_v21 = vrot.slane %v834_v62, %v1336_v36  ;;  %v489_v26 = vrot.slane %v834_v62, %v1339_v41  ;;  %v497_v31 = vrot.slane %v834_v62, %v1342_v46 }
  0xdc   : >> { %v442_v11 = vmul.f32 %v441_v3, %v437_v63  ;;  %v450_v12 = vmul.f32 %v449_v4, %v445_v0  ;;  %v458_v16 = vmul.f32 %v457_v5, %v453_v10  ;;  %v466_v20 = vmul.f32 %v465_v13, %v461_v14  ;;  %v552_v63 = vld [vmem:[#allocation8 + $0xb0] sm:$0xff]  ;;  %v560_v4 = vld [vmem:[#allocation8 + $0xb8] sm:$0xff] }
  0xdd   : >> { %v474_v25 = vmul.f32 %v473_v17, %v469_v18  ;;  %v482_v29 = vmul.f32 %v481_v21, %v477_v22  ;;  %v490_v34 = vmul.f32 %v489_v26, %v485_v27  ;;  %v498_v37 = vmul.f32 %v497_v31, %v493_v32 }
  0xde   : >> { %v443_v15 = vadd.f32 %v442_v11, %v435_v6 }
  0xe0   : >> { %v451_v19 = vadd.f32 %v450_v12, %v443_v15 }
  0xe2   : >> { %v459_v24 = vadd.f32 %v458_v16, %v451_v19 }
  0xe4   : >> { %v467_v28 = vadd.f32 %v466_v20, %v459_v24 }
  0xe6   : >> { %v475_v33 = vadd.f32 %v474_v25, %v467_v28 }
  0xe8   : >> { %v483_v35 = vadd.f32 %v482_v29, %v475_v33 }
  0xea   : >> { %v491_v38 = vadd.f32 %v490_v34, %v483_v35 }
  0xec   : >> { %v499_v39 = vadd.f32 %v498_v37, %v491_v38 }
  0xee   : >> { %835 = vtanh.f32 %v499_v39 }
  0xf8   : >> { %v836_v40 = vpop.eup %835 }
  0xf9   : >> { %v508_v44 = vrot.slane %v836_v40, %v1319_v7  ;;  %v516_v45 = vrot.slane %v836_v40, %v1321_v8  ;;  %v524_v47 = vrot.slane %v836_v40, %v1323_v9  ;;  %v532_v52 = vrot.slane %v836_v40, %v1328_v23 }
  0xfa   : >> { %v540_v56 = vrot.slane %v836_v40, %v1333_v30  ;;  %v548_v60 = vrot.slane %v836_v40, %v1336_v36  ;;  %v556_v9 = vrot.slane %v836_v40, %v1339_v41  ;;  %v564_v23 = vrot.slane %v836_v40, %v1342_v46 }
  0xfb   : >> { %v509_v50 = vmul.f32 %v508_v44, %v504_v42  ;;  %v517_v51 = vmul.f32 %v516_v45, %v512_v43  ;;  %v525_v55 = vmul.f32 %v524_v47, %v520_v49  ;;  %v533_v59 = vmul.f32 %v532_v52, %v528_v53 }
  0xfc   : >> { %v541_v62 = vmul.f32 %v540_v56, %v536_v57  ;;  %v549_v3 = vmul.f32 %v548_v60, %v544_v61  ;;  %v557_v6 = vmul.f32 %v556_v9, %v552_v63  ;;  %v565_v10 = vmul.f32 %v564_v23, %v560_v4 }
  0xfd   : >> { %v510_v54 = vadd.f32 %v509_v50, %v502_v48 }
  0xff   : >> { %v518_v58 = vadd.f32 %v517_v51, %v510_v54 }
 0x101   : >> { %v526_v8 = vadd.f32 %v525_v55, %v518_v58 }
 0x103   : >> { %v534_v0 = vadd.f32 %v533_v59, %v526_v8 }
 0x105   : >> { %v542_v5 = vadd.f32 %v541_v62, %v534_v0 }
 0x107   : >> { %v550_v30 = vadd.f32 %v549_v3, %v542_v5 }
 0x109   : >> { %v558_v11 = vadd.f32 %v557_v6, %v550_v30 }
 0x10b   : >> { %v566_v12 = vadd.f32 %v565_v10, %v558_v11 }
 0x10d   : >> { %837 = vtanh.f32 %v566_v12 }
 0x117   : >> { %v838_v36 = vpop.eup %837 }
 0x118   : >> { %v568_v13 = vmul.f32 %v838_v36, %v1305_v1 }
 0x11a   : >> { %v569_v14 = vrot.slane %v568_v13, 4 }
 0x11c   : >> { %v570_v41 = vadd.f32 %v569_v14, %v568_v13 }
 0x11e   : >> { %v571_v15 = vrot.slane %v570_v41, 2 }
 0x120   : >> { %v572_v16 = vadd.f32 %v571_v15, %v570_v41 }
 0x121   : >> { %v578_v17 = vpop.permute.xlu0 %577 }
 0x122   : >> { %v573_v18 = vrot.slane %v572_v16, 1  ;;  %v583_v46 = vrot.slane %v578_v17, %v1319_v7  ;;  %338 = sbr.rel (!%p336_p1) target bundleno = 160 (0xa0), region = 138 }
 0x124   : >> { %v574_v19 = vadd.f32 %v573_v18, %v572_v16 }
 0x126   : >> { %v584_v20 = vadd.f32 %v583_v46, %v574_v19 }
 0x128   : >> { %586 = vst [vmem:[%s585_s27] sm:$0x1] %v584_v20 }
 0x129   : > { %594 = sbr.rel (!%p1462_p3) target bundleno = 332 (0x14c), region = 71  ;;  %s737_s15 = sshll.u32 (%p1462_p3), %s1106_s5, 1 }
 0x12a   : > { %s596_s19 = ssub.s32 (%p1462_p3), 3, %s737_s15 }
 0x12b   : > { %p597_p5 = scmp.lt.s32.totalorder (%p1462_p3), %s596_s19, 2 }
 0x130   : > { %s1472_s19 = smov (!%p597_p5, %s596_s19), 2 }
 0x131   : > { %s1373_s16 = sshll.u32 %s1472_s19, 4 }
 0x132   : > { %s601_s20 = ssub.s32 32, %s1373_s16 }
 0x133   : > { %602 = vsyncadd %s588_s7, %s601_s20  ;;  %p739_p6 = scmp.ne.s32.totalorder %s1373_s16, 0  ;;  %s744_s10 = sshll.u32 %s1106_s5, 5 }
 0x134   : > { %s1383_s14 = scalar_lea.hbm %s1438_s6, %s744_s10  ;;  %s606_s17 = sshll.u32 %s1309_s9, 4  ;;  %s1386_s17 = int_to_ptr.vmem [resolvable:$true] %s606_s17 }
 0x135   : > { %s951_s1 = scalar_lea.vmem %s1386_s17, %s1373_s16  ;;  %s1044_s12 = smov [#allocation11]  }
 0x136   : > { %p952_p11 = scmp.ne.s32.totalorder %s1386_s17, %s951_s1  ;;  %s955_s21 = sshll.u32 %s1044_s12, 4  ;;  %s956_s21 = int_to_ptr.vmem [resolvable:$false] %s955_s21 }
 0x137   : > { %s957_s5 = scalar_lea.vmem %s956_s21, 64  ;;  %p958_p12 = scmp.lt.s32.totalorder %s1386_s17, %s956_s21 }
 0x138   : > { %p953_p13 = pnand %p952_p11, %p739_p6  ;;  %p959_p7 = scmp.lt.s32.totalorder %s957_s5, %s951_s1 }
 0x13a   : > { %p954_p0 = pneg %p953_p13  ;;  %p960_p2 = por %p959_p7, %p958_p12 }
 0x13c   : > { %p961_p8 = pnand %p960_p2, %p954_p0 }
 0x13e   : > { %964 = shalt.err (!%p961_p8)
}
 0x13f   : > { %s965_s18 = scalar_lea.hbm %s1383_s14, %s1373_s16  ;;  %s969_s13 = scalar_lea.hbm %s1438_s6, 48 }
 0x140   : > { %p966_p9 = scmp.ne.s32.totalorder %s1383_s14, %s965_s18  ;;  %p970_p3 = scmp.lt.u32.totalorder %s1383_s14, %s1438_s6 }
 0x141   : > { %p971_p5 = scmp.lt.u32.totalorder %s969_s13, %s965_s18  ;;  %p973_p13 = scmp.lt.u32.totalorder %s965_s18, %s1383_s14 }
 0x142   : > { %p967_p10 = pnand %p966_p9, %p739_p6 }
 0x143   : > { %p972_p11 = por %p971_p5, %p970_p3 }
 0x144   : > { %p968_p1 = pneg %p967_p10 }
 0x145   : > { %p974_p0 = por %p973_p13, %p972_p11 }
 0x147   : > { %p975_p12 = pnand %p974_p0, %p968_p1 }
 0x149   : > { %978 = shalt.err (!%p975_p12)
}
 0x14a   : > { %s1045_s15 = smov 16   ;;  %s1046_s19 = smov 1  }
 0x14b   : > { %612 = dma.vmem_to_hbm [thread:$0]  (%p739_p6), %s1386_s17, %s1373_s16, %s1383_s14, %s588_s7, %s1045_s15, %s1045_s15, %s1046_s19  }
 0x14c PF: > { %s621_s20 = sand.u32 1, %s1017_s23   ;;  %p1463_p7 = scmp.ne.s32.totalorder %s1450_s11, 0 }
 0x14d   : > { %s622_s10 = scalar_lea.sflag [#allocation5], %s621_s20 }
 0x14e   : > { %p770_p2 = pnand %p721_p4, %p1463_p7 }
 0x150   : > { %1012 = dma.done.wait (!%p770_p2), %s622_s10, 32  }
 0x151   : > { %1014 = vsyncadd (!%p770_p2), %s622_s10, 4294967264  ;;  %s1464_s26 = sld [smem:[#allocation16_spill]]  ;;  %s1465_s8 = sld [smem:[#allocation17_spill]] }
 0x152   : > { %s1466_s23 = smov %s1021_s24  ;;  %s1467_s24 = smov %s1025_s25 }
 0x157   : > { %p23_p8 = scmp.ge.s32.totalorder %s1464_s26, 4   ;;  %s1468_s25 = smov %s1465_s8 }
 0x159   :  { %25 = sbr.rel (!%p23_p8) target bundleno = 10 (0xa), region = 149 }
 0x160   :  { %627 = vsyncpa [#allocation4], 1 }
 0x161   :  { %629 = vsyncpa [#allocation4 + $0x1], 1 }
 0x162   :  { %630 = vsyncpa [#allocation7], 1 }
 0x163   :  { %631 = vsyncpa [#allocation10], 1 }
 0x164   :  { %632 = vsyncpa [#allocation5], 1 }
 0x165   :  { %634 = vsyncpa [#allocation5 + $0x1], 1 }

</bundles_post_ra>
